<compile_context>
chip_gen: v5e
topology: v5e:2x2
jax: 0.10.0
libtpu: 0.0.40
codegen_flags: <defaults>
</compile_context>

<pallas_src>
import jax
import jax.numpy as jnp
from jax.experimental import pallas as pl
from jax.experimental.pallas import tpu as pltpu

_LANE = 128


def _relu_kernel(x_ref, o_ref):
    # Pure VPU elementwise max against 0; preserves dtype (bf16 stays bf16).
    x = x_ref[...]
    o_ref[...] = jnp.maximum(x, jnp.zeros((), dtype=x.dtype))


def relu_forward(x: jax.Array, *, tile_rows: int = 2048, lane: int = _LANE) -> jax.Array:
    """Elementwise ReLU. Uses a Pallas TPU kernel for large, lane-aligned inputs."""
    n = x.size
    if n == 0:
        return x

    block_elems = tile_rows * lane  # 2048 * 128 f32 = 1 MiB per block

    # Fast path: small inputs (launch overhead dominates) or shapes that do not
    # reshape zero-copy onto an (8,128)-aligned 2D layout. XLA's fused
    # elementwise op is already at the HBM roofline for these; this also avoids
    # any pad/slice copies around the kernel.
    if (n % (8 * lane) != 0) or (n < block_elems):
        return jnp.maximum(x, jnp.zeros((), dtype=x.dtype))

    rows = n // lane
    x2d = x.reshape(rows, lane)  # contiguous reshape: no padding, no copy

    grid = (pl.cdiv(rows, tile_rows),)  # >= 2 steps for realistic sizes -> both v7x TCs stream

    out2d = pl.pallas_call(
        _relu_kernel,
        out_shape=jax.ShapeDtypeStruct((rows, lane), x.dtype),
        grid_spec=pltpu.PrefetchScalarGridSpec(
            num_scalar_prefetch=0,
            grid=grid,
            in_specs=[pl.BlockSpec((tile_rows, lane), lambda i: (i, 0))],
            out_specs=pl.BlockSpec((tile_rows, lane), lambda i: (i, 0)),
        ),
        compiler_params=pltpu.CompilerParams(
            dimension_semantics=("parallel",),
            # 1 MiB block, double-buffered input + output = 4 MiB; cap explicitly
            # with headroom so v5e (16 MiB scoped default) and v7x (64 MiB VMEM)
            # are both safe.
            vmem_limit_bytes=32 * 1024 * 1024,
        ),
    )(x2d)

    return out2d.reshape(x.shape)


class ReLU:
    """JAX/Pallas equivalent of the PyTorch `ReLU` module (no parameters)."""

    def __init__(self) -> None:
        self.training = True

    def __call__(self, x: jax.Array) -> jax.Array:
        return self.forward(x)

    def forward(self, x: jax.Array) -> jax.Array:
        return relu_forward(x)


if __name__ == "__main__":
    key = jax.random.PRNGKey(0)
    module = ReLU()

    # 1) Small input consistent with the module usage (batch=2, channels=4, 16x16).
    #    This exercises the small-input fast path.
    x_small = jax.random.normal(key, (2, 4, 16, 16), dtype=jnp.float32)
    y_small = jax.block_until_ready(module(x_small))
    assert y_small.shape == x_small.shape and y_small.dtype == x_small.dtype
    assert jnp.allclose(y_small, jnp.maximum(x_small, 0.0), atol=0.0, rtol=0.0)

    # 2) Larger lane-aligned input that exercises the Pallas kernel path
    #    (rows = 8192, grid = 4 parallel steps of (2048, 128) blocks).
    k1, k2 = jax.random.split(key)
    x_big = jax.random.normal(k1, (1024, 1024), dtype=jnp.float32)
    y_big = jax.block_until_ready(module(x_big))
    assert y_big.shape == x_big.shape and y_big.dtype == x_big.dtype
    assert jnp.allclose(y_big, jnp.maximum(x_big, 0.0), atol=0.0, rtol=0.0)

    # 3) Kernel path with a partial tail block (rows = 3840, grid = 2, second
    #    block masked) to confirm edge handling.
    x_tail = jax.random.normal(k2, (30, 128, 128), dtype=jnp.float32)
    y_tail = jax.block_until_ready(module(x_tail))
    assert y_tail.shape == x_tail.shape and y_tail.dtype == x_tail.dtype
    assert jnp.allclose(y_tail, jnp.maximum(x_tail, 0.0), atol=0.0, rtol=0.0)

    print("KERNEL_OK")
</pallas_src>

<mosaic_0001>
module attributes {stable_mosaic.version = 11 : i64} {
  func.func @_relu_kernel(%arg0: i32, %arg1: memref<2048x128xf32, #tpu.memory_space<vmem>>, %arg2: memref<2048x128xf32, #tpu.memory_space<vmem>>) attributes {dimension_semantics = [#tpu.dimension_semantics<parallel>], iteration_bounds = array<i64: 4>, scalar_prefetch = 0 : i64, scratch_operands = 0 : i64, tpu.core_type = #tpu.core_type<tc>, window_params = [{transform_indices = @transform_0, window_bounds = array<i64: 2048, 128>}, {transform_indices = @transform_1, window_bounds = array<i64: 2048, 128>}]} {
    %c0 = arith.constant 0 : index
    %c0_0 = arith.constant 0 : index
    %0 = vector.load %arg1[%c0, %c0_0] : memref<2048x128xf32, #tpu.memory_space<vmem>>, vector<2048x128xf32>
    %cst = arith.constant 0.000000e+00 : f32
    %1 = vector.broadcast %cst : f32 to vector<2048x128xf32>
    %2 = arith.maximumf %0, %1 : vector<2048x128xf32>
    %c0_1 = arith.constant 0 : index
    %c0_2 = arith.constant 0 : index
    %3 = vector.load %arg2[%c0_1, %c0_2] : memref<2048x128xf32, #tpu.memory_space<vmem>>, vector<2048x128xf32>
    tpu.vector_store %arg2[%c0_1, %c0_2], %2 {strides = array<i32>} : memref<2048x128xf32, #tpu.memory_space<vmem>>, vector<2048x128xf32>,
    return
  }
  func.func @transform_0(%arg0: i32) -> (i32, i32) {
    %c0_i32 = arith.constant 0 : i32
    %c0_i32_0 = arith.constant 0 : i32
    return %arg0, %c0_i32 : i32, i32
  }
  func.func @transform_1(%arg0: i32) -> (i32, i32) {
    %c0_i32 = arith.constant 0 : i32
    %c0_i32_0 = arith.constant 0 : i32
    return %arg0, %c0_i32 : i32, i32
  }
}

</mosaic_0001>

<bundles_post_ra>
// kernel: tpu_custom_call.1
= control target key start
LH: loop header
LB: loop body
LE: loop exit
PB: predicated region body
PF: predicated region fallthrough
CT: control target
= control target key end

     0   :  { %6 = vsyncpa [#allocation3], 0  ;;  %s1816_s0 = inlined_call_operand.hbm [shape: f32[8192,128], index: 0, kind: input, shape index: {}]   ;;  %s1817_s1 = inlined_call_operand.hbm [shape: f32[8192,128], index: 1, kind: output, shape index: {}]  }
   0x1   :  { %8 = vsyncpa [#allocation3 + $0x1], 0 }
   0x2   :  { %9 = vsyncpa [#allocation4], 0 }
   0x3   :  { %11 = vsyncpa [#allocation4 + $0x1], 0  ;;  %s1174_s6 = smov 0   ;;  %s1176_s7 = smov 0  }
   0x4   :  { %s1178_s8 = smov 0   ;;  %s1180_s9 = smov 0  }
   0x5 LB: > { %s1195_s10 = sadd.s32 4294967295, %s1158_s9   ;;  %s996_s11 = sadd.s32 4294967294, %s1158_s9   ;;  %s1158_s9 = sphi %s1180_s9, %s1826_s9   ;;  %s1154_s8 = sphi %s1178_s8, %s1825_s8   ;;  %s1150_s7 = sphi %s1176_s7, %s1824_s7   ;;  %s1146_s6 = sphi %s1174_s6, %s1823_s6  }
   0x6   : > { %s1199_s12 = sadd.s32 1, %s1158_s9   ;;  %s24_s13 = sadd.s32 1, %s1154_s8 }
   0x7   : > { %s21_s14 = ssub.s32 %s1158_s9, %s1199_s12  ;;  %p31_p0 = scmp.ne.s32.totalorder %s1154_s8, %s1150_s7 }
   0x8   : > { %p22_p1 = scmp.eq.s32.totalorder %s21_s14, 0  ;;  %p32_p2 = scmp.eq.s32.totalorder %s1158_s9, 0 }
   0x9   : > { %p37_p3 = scmp.ne.s32.totalorder %s1150_s7, %s1146_s6  ;;  %p38_p4 = scmp.eq.s32.totalorder %s1195_s10, 0 }
   0xa   : > { %s1211_s15 = scalar_select %p22_p1, %s1154_s8, %s24_s13  }
   0xb   : > { %p1213_p5 = por %p32_p2, %p31_p0  ;;  %p1217_p6 = por %p38_p4, %p37_p3 }
   0xc   : > { %p61_p7 = scmp.eq.s32.totalorder %s1195_s10, 3  ;;  %p67_p8 = scmp.eq.s32.totalorder %s996_s11, 3 }
   0xd   : > { %p1024_p9 = scmp.lt.s32.totalorder %s1158_s9, 4  ;;  %s87_s20 = sand.u32 1, %s1154_s8  }
   0xe   : > { %p1223_p10 = por %p61_p7, %p31_p0  ;;  %p1227_p11 = por %p67_p8, %p37_p3 }
   0xf   : > { %s1010_s21 = sshll.u32 %s1158_s9, 11  ;;  %s999_s22 = sshll.u32 %s87_s20, 11 }
  0x10   : > { %s96_s25 = scalar_lea.hbm %s1816_s0, %s1010_s21  ;;  %s91_s27 = scalar_lea.vmem [#allocation2], %s999_s22 }
  0x11   : > { %s97_s26 = sshll.u32 %s96_s25, 4  ;;  %s99_s28 = sshll.u32 %s91_s27, 4  ;;  %s98_s26 = int_to_ptr.hbm [resolvable:$true] %s97_s26  ;;  %s100_s28 = int_to_ptr.vmem [resolvable:$true] %s99_s28 }
  0x12   : > { %p1238_p12 = pnand %p1024_p9, %p1213_p5  ;;  %p1002_p13 = scmp.ge.s32.totalorder %s1158_s9, 1 }
  0x13   : > { %p107_p0 = scmp.lt.s32.totalorder %s1158_s9, 5  ;;  %s88_s30 = scalar_lea.sflag [#allocation3], %s87_s20 }
  0x14   : > { %s1062_s2 = sshra.s32 %s98_s26, 4  ;;  %p1066_p2 = pneg %p1238_p12  ;;  %s1063_s2 = int_to_ptr.hbm [resolvable:$true] %s1062_s2 }
  0x15   : > { %s1064_s3 = scalar_lea.hbm %s1063_s2, 2048  ;;  %s1069_s11 = scalar_lea.hbm %s1816_s0, 8192 }
  0x16   : > { %p1065_p1 = scmp.ne.s32.totalorder %s1063_s2, %s1064_s3  ;;  %p1070_p5 = scmp.lt.s32.totalorder %s1063_s2, %s1816_s0 }
  0x17   : > { %p1071_p7 = scmp.lt.s32.totalorder %s1069_s11, %s1064_s3 }
  0x18   : > { %p1067_p3 = pnand %p1066_p2, %p1065_p1 }
  0x19   : > { %p1072_p8 = por %p1071_p7, %p1070_p5 }
  0x1a   : > { %p1068_p4 = pneg %p1067_p3 }
  0x1c   : > { %p1073_p9 = pnand %p1072_p8, %p1068_p4 }
  0x1e   : > { %1076 = shalt.err (!%p1073_p9)
}
  0x1f   : > { %s1160_s16 = smov 128   ;;  %s1161_s20 = smov 8  }
  0x20   : > { %1019 = dma.hbm_to_vmem [thread:$0]  (!%p1238_p12), %s98_s26, 32768, %s100_s28, %s88_s30, %s1160_s16, %s1160_s16, %s1161_s20  }
  0x21   : > { %p108_p1 = pnand %p1002_p13, %p107_p0 }
  0x22   : > { %s1259_s21 = sand.u32 (!%p108_p1), 1, %s1150_s7  }
  0x23   : > { %111 = sbr.rel (%p108_p1) target bundleno = 303 (0x12f), region = 24  ;;  %s1003_s22 = sshll.u32 (!%p108_p1), %s1259_s21, 11 }
  0x24   : > { %s114_s23 = scalar_lea.sflag (!%p108_p1), [#allocation3], %s1259_s21  ;;  %s1263_s24 = scalar_lea.vmem (!%p108_p1), [#allocation2], %s1003_s22 }
  0x28   : > { %1137 = dma.done.wait (%p1217_p6), %s114_s23, 32768  }
  0x29   : > { %1139 = vsyncadd (%p1217_p6), %s114_s23, 4294934528  ;;  %v139_v0 = vld [vmem:[%s1263_s24] sm:$0xff]  ;;  %v140_v1 = vld [vmem:[%s1263_s24 + $0x8] sm:$0xff]  ;;  %s1276_s17 = scalar_lea.vmem [#allocation5], %s1003_s22  ;;  %s1011_s25 = sshll.u32 %s1195_s10, 11 }
  0x2a   : > { %v141_v2 = vld [vmem:[%s1263_s24 + $0x10] sm:$0xff]  ;;  %v395_v3 = vmax.f32 %v139_v0, 0.0  ;;  %v396_v4 = vmax.f32 %v140_v1, 0.0  ;;  %v142_v6 = vld [vmem:[%s1263_s24 + $0x18] sm:$0xff]  ;;  %v143_v7 = vld [vmem:[%s1263_s24 + $0x20] sm:$0xff]  ;;  %s919_s28 = scalar_lea.hbm %s1817_s1, %s1011_s25  ;;  %s920_s10 = sshll.u32 %s1276_s17, 4  ;;  %s921_s10 = int_to_ptr.vmem [resolvable:$true] %s920_s10 }
  0x2b   : > { %v397_v5 = vmax.f32 %v141_v2, 0.0  ;;  %v144_v8 = vld [vmem:[%s1263_s24 + $0x28] sm:$0xff]  ;;  %v398_v9 = vmax.f32 %v142_v6, 0.0  ;;  %v145_v10 = vld [vmem:[%s1263_s24 + $0x30] sm:$0xff]  ;;  %v399_v11 = vmax.f32 %v143_v7, 0.0  ;;  %v146_v12 = vld [vmem:[%s1263_s24 + $0x38] sm:$0xff] }
  0x2c   : > { %651 = vst [vmem:[%s1276_s17] sm:$0xff] %v395_v3  ;;  %v400_v13 = vmax.f32 %v144_v8, 0.0  ;;  %v147_v14 = vld [vmem:[%s1263_s24 + $0x40] sm:$0xff]  ;;  %v401_v15 = vmax.f32 %v145_v10, 0.0  ;;  %v148_v16 = vld [vmem:[%s1263_s24 + $0x48] sm:$0xff]  ;;  %v402_v17 = vmax.f32 %v146_v12, 0.0  ;;  %v149_v18 = vld [vmem:[%s1263_s24 + $0x50] sm:$0xff] }
  0x2d   : > { %652 = vst [vmem:[%s1276_s17 + $0x8] sm:$0xff] %v396_v4  ;;  %v403_v19 = vmax.f32 %v147_v14, 0.0  ;;  %v150_v20 = vld [vmem:[%s1263_s24 + $0x58] sm:$0xff]  ;;  %v404_v21 = vmax.f32 %v148_v16, 0.0  ;;  %v151_v22 = vld [vmem:[%s1263_s24 + $0x60] sm:$0xff]  ;;  %v405_v23 = vmax.f32 %v149_v18, 0.0 }
  0x2e   : > { %653 = vst [vmem:[%s1276_s17 + $0x10] sm:$0xff] %v397_v5  ;;  %v152_v24 = vld [vmem:[%s1263_s24 + $0x68] sm:$0xff]  ;;  %v406_v25 = vmax.f32 %v150_v20, 0.0  ;;  %v153_v26 = vld [vmem:[%s1263_s24 + $0x70] sm:$0xff]  ;;  %v407_v27 = vmax.f32 %v151_v22, 0.0  ;;  %v154_v28 = vld [vmem:[%s1263_s24 + $0x78] sm:$0xff] }
  0x2f   : > { %654 = vst [vmem:[%s1276_s17 + $0x18] sm:$0xff] %v398_v9  ;;  %v408_v29 = vmax.f32 %v152_v24, 0.0  ;;  %v155_v30 = vld [vmem:[%s1263_s24 + $0x80] sm:$0xff]  ;;  %v409_v31 = vmax.f32 %v153_v26, 0.0  ;;  %v156_v32 = vld [vmem:[%s1263_s24 + $0x88] sm:$0xff]  ;;  %v410_v33 = vmax.f32 %v154_v28, 0.0 }
  0x30   : > { %655 = vst [vmem:[%s1276_s17 + $0x20] sm:$0xff] %v399_v11  ;;  %v157_v34 = vld [vmem:[%s1263_s24 + $0x90] sm:$0xff]  ;;  %v411_v35 = vmax.f32 %v155_v30, 0.0  ;;  %v158_v36 = vld [vmem:[%s1263_s24 + $0x98] sm:$0xff]  ;;  %v412_v37 = vmax.f32 %v156_v32, 0.0  ;;  %v159_v38 = vld [vmem:[%s1263_s24 + $0xa0] sm:$0xff] }
  0x31   : > { %656 = vst [vmem:[%s1276_s17 + $0x28] sm:$0xff] %v400_v13  ;;  %v413_v39 = vmax.f32 %v157_v34, 0.0  ;;  %v160_v40 = vld [vmem:[%s1263_s24 + $0xa8] sm:$0xff]  ;;  %v414_v41 = vmax.f32 %v158_v36, 0.0  ;;  %v161_v42 = vld [vmem:[%s1263_s24 + $0xb0] sm:$0xff]  ;;  %v415_v43 = vmax.f32 %v159_v38, 0.0 }
  0x32   : > { %657 = vst [vmem:[%s1276_s17 + $0x30] sm:$0xff] %v401_v15  ;;  %v162_v44 = vld [vmem:[%s1263_s24 + $0xb8] sm:$0xff]  ;;  %v416_v45 = vmax.f32 %v160_v40, 0.0  ;;  %v163_v46 = vld [vmem:[%s1263_s24 + $0xc0] sm:$0xff]  ;;  %v417_v47 = vmax.f32 %v161_v42, 0.0  ;;  %v164_v48 = vld [vmem:[%s1263_s24 + $0xc8] sm:$0xff] }
  0x33   : > { %658 = vst [vmem:[%s1276_s17 + $0x38] sm:$0xff] %v402_v17  ;;  %v418_v49 = vmax.f32 %v162_v44, 0.0  ;;  %v165_v50 = vld [vmem:[%s1263_s24 + $0xd0] sm:$0xff]  ;;  %v419_v51 = vmax.f32 %v163_v46, 0.0  ;;  %v166_v52 = vld [vmem:[%s1263_s24 + $0xd8] sm:$0xff]  ;;  %v420_v53 = vmax.f32 %v164_v48, 0.0 }
  0x34   : > { %659 = vst [vmem:[%s1276_s17 + $0x40] sm:$0xff] %v403_v19  ;;  %v167_v54 = vld [vmem:[%s1263_s24 + $0xe0] sm:$0xff]  ;;  %v421_v55 = vmax.f32 %v165_v50, 0.0  ;;  %v168_v56 = vld [vmem:[%s1263_s24 + $0xe8] sm:$0xff]  ;;  %v422_v57 = vmax.f32 %v166_v52, 0.0  ;;  %v169_v58 = vld [vmem:[%s1263_s24 + $0xf0] sm:$0xff] }
  0x35   : > { %660 = vst [vmem:[%s1276_s17 + $0x48] sm:$0xff] %v404_v21  ;;  %v423_v59 = vmax.f32 %v167_v54, 0.0  ;;  %v170_v60 = vld [vmem:[%s1263_s24 + $0xf8] sm:$0xff]  ;;  %v424_v61 = vmax.f32 %v168_v56, 0.0  ;;  %v171_v62 = vld [vmem:[%s1263_s24 + $0x100] sm:$0xff]  ;;  %v425_v63 = vmax.f32 %v169_v58, 0.0 }
  0x36   : > { %661 = vst [vmem:[%s1276_s17 + $0x50] sm:$0xff] %v405_v23  ;;  %v172_v0 = vld [vmem:[%s1263_s24 + $0x108] sm:$0xff]  ;;  %v426_v1 = vmax.f32 %v170_v60, 0.0  ;;  %v173_v2 = vld [vmem:[%s1263_s24 + $0x110] sm:$0xff]  ;;  %v427_v3 = vmax.f32 %v171_v62, 0.0  ;;  %v174_v4 = vld [vmem:[%s1263_s24 + $0x118] sm:$0xff] }
  0x37   : > { %662 = vst [vmem:[%s1276_s17 + $0x58] sm:$0xff] %v406_v25  ;;  %v428_v5 = vmax.f32 %v172_v0, 0.0  ;;  %v175_v6 = vld [vmem:[%s1263_s24 + $0x120] sm:$0xff]  ;;  %v429_v7 = vmax.f32 %v173_v2, 0.0  ;;  %v176_v8 = vld [vmem:[%s1263_s24 + $0x128] sm:$0xff]  ;;  %v430_v9 = vmax.f32 %v174_v4, 0.0 }
  0x38   : > { %663 = vst [vmem:[%s1276_s17 + $0x60] sm:$0xff] %v407_v27  ;;  %v177_v10 = vld [vmem:[%s1263_s24 + $0x130] sm:$0xff]  ;;  %v431_v11 = vmax.f32 %v175_v6, 0.0  ;;  %v178_v12 = vld [vmem:[%s1263_s24 + $0x138] sm:$0xff]  ;;  %v432_v13 = vmax.f32 %v176_v8, 0.0  ;;  %v179_v14 = vld [vmem:[%s1263_s24 + $0x140] sm:$0xff] }
  0x39   : > { %664 = vst [vmem:[%s1276_s17 + $0x68] sm:$0xff] %v408_v29  ;;  %v433_v15 = vmax.f32 %v177_v10, 0.0  ;;  %v180_v16 = vld [vmem:[%s1263_s24 + $0x148] sm:$0xff]  ;;  %v434_v17 = vmax.f32 %v178_v12, 0.0  ;;  %v181_v18 = vld [vmem:[%s1263_s24 + $0x150] sm:$0xff]  ;;  %v435_v19 = vmax.f32 %v179_v14, 0.0 }
  0x3a   : > { %665 = vst [vmem:[%s1276_s17 + $0x70] sm:$0xff] %v409_v31  ;;  %v182_v20 = vld [vmem:[%s1263_s24 + $0x158] sm:$0xff]  ;;  %v436_v21 = vmax.f32 %v180_v16, 0.0  ;;  %v183_v22 = vld [vmem:[%s1263_s24 + $0x160] sm:$0xff]  ;;  %v437_v23 = vmax.f32 %v181_v18, 0.0  ;;  %v184_v24 = vld [vmem:[%s1263_s24 + $0x168] sm:$0xff] }
  0x3b   : > { %666 = vst [vmem:[%s1276_s17 + $0x78] sm:$0xff] %v410_v33  ;;  %v438_v25 = vmax.f32 %v182_v20, 0.0  ;;  %v185_v26 = vld [vmem:[%s1263_s24 + $0x170] sm:$0xff]  ;;  %v439_v27 = vmax.f32 %v183_v22, 0.0  ;;  %v186_v28 = vld [vmem:[%s1263_s24 + $0x178] sm:$0xff]  ;;  %v440_v29 = vmax.f32 %v184_v24, 0.0 }
  0x3c   : > { %667 = vst [vmem:[%s1276_s17 + $0x80] sm:$0xff] %v411_v35  ;;  %v187_v30 = vld [vmem:[%s1263_s24 + $0x180] sm:$0xff]  ;;  %v441_v31 = vmax.f32 %v185_v26, 0.0  ;;  %v188_v32 = vld [vmem:[%s1263_s24 + $0x188] sm:$0xff]  ;;  %v442_v33 = vmax.f32 %v186_v28, 0.0  ;;  %v189_v34 = vld [vmem:[%s1263_s24 + $0x190] sm:$0xff] }
  0x3d   : > { %668 = vst [vmem:[%s1276_s17 + $0x88] sm:$0xff] %v412_v37  ;;  %v443_v35 = vmax.f32 %v187_v30, 0.0  ;;  %v190_v36 = vld [vmem:[%s1263_s24 + $0x198] sm:$0xff]  ;;  %v444_v37 = vmax.f32 %v188_v32, 0.0  ;;  %v191_v38 = vld [vmem:[%s1263_s24 + $0x1a0] sm:$0xff]  ;;  %v192_v40 = vld [vmem:[%s1263_s24 + $0x1a8] sm:$0xff] }
  0x3e   : > { %669 = vst [vmem:[%s1276_s17 + $0x90] sm:$0xff] %v413_v39  ;;  %v445_v39 = vmax.f32 %v189_v34, 0.0  ;;  %v193_v42 = vld [vmem:[%s1263_s24 + $0x1b0] sm:$0xff]  ;;  %v194_v44 = vld [vmem:[%s1263_s24 + $0x1b8] sm:$0xff]  ;;  %v195_v46 = vld [vmem:[%s1263_s24 + $0x1c0] sm:$0xff]  ;;  %s922_s29 = sshll.u32 %s919_s28, 4  ;;  %s923_s29 = int_to_ptr.hbm [resolvable:$true] %s922_s29 }
  0x3f   : > { %670 = vst [vmem:[%s1276_s17 + $0x98] sm:$0xff] %v414_v41  ;;  %v446_v41 = vmax.f32 %v190_v36, 0.0  ;;  %v196_v48 = vld [vmem:[%s1263_s24 + $0x1c8] sm:$0xff]  ;;  %v197_v50 = vld [vmem:[%s1263_s24 + $0x1d0] sm:$0xff]  ;;  %v198_v52 = vld [vmem:[%s1263_s24 + $0x1d8] sm:$0xff]  ;;  %s908_s30 = scalar_lea.sflag [#allocation4], %s1259_s21 }
  0x40   : > { %671 = vst [vmem:[%s1276_s17 + $0xa0] sm:$0xff] %v415_v43  ;;  %v447_v43 = vmax.f32 %v191_v38, 0.0  ;;  %v199_v54 = vld [vmem:[%s1263_s24 + $0x1e0] sm:$0xff]  ;;  %v200_v56 = vld [vmem:[%s1263_s24 + $0x1e8] sm:$0xff]  ;;  %v201_v58 = vld [vmem:[%s1263_s24 + $0x1f0] sm:$0xff]  ;;  %s1106_s2 = sshra.s32 %s923_s29, 4  ;;  %s1107_s2 = int_to_ptr.hbm [resolvable:$true] %s1106_s2 }
  0x41   : > { %672 = vst [vmem:[%s1276_s17 + $0xa8] sm:$0xff] %v416_v45  ;;  %v448_v45 = vmax.f32 %v192_v40, 0.0  ;;  %v202_v60 = vld [vmem:[%s1263_s24 + $0x1f8] sm:$0xff]  ;;  %v203_v62 = vld [vmem:[%s1263_s24 + $0x200] sm:$0xff]  ;;  %v204_v0 = vld [vmem:[%s1263_s24 + $0x208] sm:$0xff]  ;;  %s1108_s3 = scalar_lea.hbm %s1107_s2, 2048  ;;  %p1113_p0 = scmp.lt.s32.totalorder %s1107_s2, %s1817_s1 }
  0x42   : > { %673 = vst [vmem:[%s1276_s17 + $0xb0] sm:$0xff] %v417_v47  ;;  %v449_v47 = vmax.f32 %v193_v42, 0.0  ;;  %v205_v2 = vld [vmem:[%s1263_s24 + $0x210] sm:$0xff]  ;;  %v206_v4 = vld [vmem:[%s1263_s24 + $0x218] sm:$0xff]  ;;  %v207_v6 = vld [vmem:[%s1263_s24 + $0x220] sm:$0xff]  ;;  %p1109_p6 = scmp.ne.s32.totalorder %s1107_s2, %s1108_s3  ;;  %s1112_s11 = scalar_lea.hbm %s1817_s1, 8192 }
  0x43   : > { %674 = vst [vmem:[%s1276_s17 + $0xb8] sm:$0xff] %v418_v49  ;;  %v450_v49 = vmax.f32 %v194_v44, 0.0  ;;  %v208_v8 = vld [vmem:[%s1263_s24 + $0x228] sm:$0xff]  ;;  %v209_v10 = vld [vmem:[%s1263_s24 + $0x230] sm:$0xff]  ;;  %v210_v12 = vld [vmem:[%s1263_s24 + $0x238] sm:$0xff]  ;;  %p1114_p2 = scmp.lt.s32.totalorder %s1112_s11, %s1108_s3 }
  0x44   : > { %675 = vst [vmem:[%s1276_s17 + $0xc0] sm:$0xff] %v419_v51  ;;  %v451_v51 = vmax.f32 %v195_v46, 0.0  ;;  %v211_v14 = vld [vmem:[%s1263_s24 + $0x240] sm:$0xff]  ;;  %v212_v16 = vld [vmem:[%s1263_s24 + $0x248] sm:$0xff]  ;;  %v213_v18 = vld [vmem:[%s1263_s24 + $0x250] sm:$0xff]  ;;  %p1110_p12 = pnand %p1109_p6, %p1223_p10 }
  0x45   : > { %676 = vst [vmem:[%s1276_s17 + $0xc8] sm:$0xff] %v420_v53  ;;  %v452_v53 = vmax.f32 %v196_v48, 0.0  ;;  %v214_v20 = vld [vmem:[%s1263_s24 + $0x258] sm:$0xff]  ;;  %v215_v22 = vld [vmem:[%s1263_s24 + $0x260] sm:$0xff]  ;;  %v216_v24 = vld [vmem:[%s1263_s24 + $0x268] sm:$0xff]  ;;  %p1115_p3 = por %p1114_p2, %p1113_p0 }
  0x46   : > { %677 = vst [vmem:[%s1276_s17 + $0xd0] sm:$0xff] %v421_v55  ;;  %v453_v55 = vmax.f32 %v197_v50, 0.0  ;;  %v217_v26 = vld [vmem:[%s1263_s24 + $0x270] sm:$0xff]  ;;  %v218_v28 = vld [vmem:[%s1263_s24 + $0x278] sm:$0xff]  ;;  %v219_v30 = vld [vmem:[%s1263_s24 + $0x280] sm:$0xff]  ;;  %p1111_p13 = pneg %p1110_p12 }
  0x47   : > { %678 = vst [vmem:[%s1276_s17 + $0xd8] sm:$0xff] %v422_v57  ;;  %v454_v57 = vmax.f32 %v198_v52, 0.0  ;;  %v220_v32 = vld [vmem:[%s1263_s24 + $0x288] sm:$0xff]  ;;  %v221_v34 = vld [vmem:[%s1263_s24 + $0x290] sm:$0xff]  ;;  %v222_v36 = vld [vmem:[%s1263_s24 + $0x298] sm:$0xff] }
  0x48   : > { %679 = vst [vmem:[%s1276_s17 + $0xe0] sm:$0xff] %v423_v59  ;;  %v455_v59 = vmax.f32 %v199_v54, 0.0  ;;  %v223_v38 = vld [vmem:[%s1263_s24 + $0x2a0] sm:$0xff]  ;;  %v224_v40 = vld [vmem:[%s1263_s24 + $0x2a8] sm:$0xff]  ;;  %v225_v42 = vld [vmem:[%s1263_s24 + $0x2b0] sm:$0xff]  ;;  %p1116_p4 = pnand %p1115_p3, %p1111_p13 }
  0x49   : > { %680 = vst [vmem:[%s1276_s17 + $0xe8] sm:$0xff] %v424_v61  ;;  %v456_v61 = vmax.f32 %v200_v56, 0.0  ;;  %v226_v44 = vld [vmem:[%s1263_s24 + $0x2b8] sm:$0xff]  ;;  %v227_v46 = vld [vmem:[%s1263_s24 + $0x2c0] sm:$0xff]  ;;  %v228_v48 = vld [vmem:[%s1263_s24 + $0x2c8] sm:$0xff] }
  0x4a   : > { %681 = vst [vmem:[%s1276_s17 + $0xf0] sm:$0xff] %v425_v63  ;;  %v457_v63 = vmax.f32 %v201_v58, 0.0  ;;  %v229_v50 = vld [vmem:[%s1263_s24 + $0x2d0] sm:$0xff]  ;;  %v230_v52 = vld [vmem:[%s1263_s24 + $0x2d8] sm:$0xff]  ;;  %v231_v54 = vld [vmem:[%s1263_s24 + $0x2e0] sm:$0xff] }
  0x4b   : > { %682 = vst [vmem:[%s1276_s17 + $0xf8] sm:$0xff] %v426_v1  ;;  %v458_v1 = vmax.f32 %v202_v60, 0.0  ;;  %v232_v56 = vld [vmem:[%s1263_s24 + $0x2e8] sm:$0xff]  ;;  %v233_v58 = vld [vmem:[%s1263_s24 + $0x2f0] sm:$0xff]  ;;  %v234_v60 = vld [vmem:[%s1263_s24 + $0x2f8] sm:$0xff] }
  0x4c   : > { %683 = vst [vmem:[%s1276_s17 + $0x100] sm:$0xff] %v427_v3  ;;  %v459_v3 = vmax.f32 %v203_v62, 0.0  ;;  %v235_v62 = vld [vmem:[%s1263_s24 + $0x300] sm:$0xff] }
  0x4d   : > { %684 = vst [vmem:[%s1276_s17 + $0x108] sm:$0xff] %v428_v5  ;;  %v460_v5 = vmax.f32 %v204_v0, 0.0  ;;  %v236_v0 = vld [vmem:[%s1263_s24 + $0x308] sm:$0xff] }
  0x4e   : > { %685 = vst [vmem:[%s1276_s17 + $0x110] sm:$0xff] %v429_v7  ;;  %v461_v7 = vmax.f32 %v205_v2, 0.0  ;;  %v237_v2 = vld [vmem:[%s1263_s24 + $0x310] sm:$0xff] }
  0x4f   : > { %686 = vst [vmem:[%s1276_s17 + $0x118] sm:$0xff] %v430_v9  ;;  %v462_v9 = vmax.f32 %v206_v4, 0.0  ;;  %v238_v4 = vld [vmem:[%s1263_s24 + $0x318] sm:$0xff] }
  0x50   : > { %687 = vst [vmem:[%s1276_s17 + $0x120] sm:$0xff] %v431_v11  ;;  %v463_v11 = vmax.f32 %v207_v6, 0.0  ;;  %v239_v6 = vld [vmem:[%s1263_s24 + $0x320] sm:$0xff] }
  0x51   : > { %688 = vst [vmem:[%s1276_s17 + $0x128] sm:$0xff] %v432_v13  ;;  %v464_v13 = vmax.f32 %v208_v8, 0.0  ;;  %v240_v8 = vld [vmem:[%s1263_s24 + $0x328] sm:$0xff] }
  0x52   : > { %689 = vst [vmem:[%s1276_s17 + $0x130] sm:$0xff] %v433_v15  ;;  %v465_v15 = vmax.f32 %v209_v10, 0.0  ;;  %v241_v10 = vld [vmem:[%s1263_s24 + $0x330] sm:$0xff] }
  0x53   : > { %690 = vst [vmem:[%s1276_s17 + $0x138] sm:$0xff] %v434_v17  ;;  %v466_v17 = vmax.f32 %v210_v12, 0.0  ;;  %v242_v12 = vld [vmem:[%s1263_s24 + $0x338] sm:$0xff] }
  0x54   : > { %691 = vst [vmem:[%s1276_s17 + $0x140] sm:$0xff] %v435_v19  ;;  %v467_v19 = vmax.f32 %v211_v14, 0.0  ;;  %v243_v14 = vld [vmem:[%s1263_s24 + $0x340] sm:$0xff] }
  0x55   : > { %692 = vst [vmem:[%s1276_s17 + $0x148] sm:$0xff] %v436_v21  ;;  %v468_v21 = vmax.f32 %v212_v16, 0.0  ;;  %v244_v16 = vld [vmem:[%s1263_s24 + $0x348] sm:$0xff] }
  0x56   : > { %693 = vst [vmem:[%s1276_s17 + $0x150] sm:$0xff] %v437_v23  ;;  %v469_v23 = vmax.f32 %v213_v18, 0.0  ;;  %v245_v18 = vld [vmem:[%s1263_s24 + $0x350] sm:$0xff] }
  0x57   : > { %694 = vst [vmem:[%s1276_s17 + $0x158] sm:$0xff] %v438_v25  ;;  %v470_v25 = vmax.f32 %v214_v20, 0.0  ;;  %v246_v20 = vld [vmem:[%s1263_s24 + $0x358] sm:$0xff] }
  0x58   : > { %695 = vst [vmem:[%s1276_s17 + $0x160] sm:$0xff] %v439_v27  ;;  %v471_v27 = vmax.f32 %v215_v22, 0.0  ;;  %v247_v22 = vld [vmem:[%s1263_s24 + $0x360] sm:$0xff] }
  0x59   : > { %696 = vst [vmem:[%s1276_s17 + $0x168] sm:$0xff] %v440_v29  ;;  %v472_v29 = vmax.f32 %v216_v24, 0.0  ;;  %v248_v24 = vld [vmem:[%s1263_s24 + $0x368] sm:$0xff] }
  0x5a   : > { %697 = vst [vmem:[%s1276_s17 + $0x170] sm:$0xff] %v441_v31  ;;  %v473_v31 = vmax.f32 %v217_v26, 0.0  ;;  %v249_v26 = vld [vmem:[%s1263_s24 + $0x370] sm:$0xff] }
  0x5b   : > { %698 = vst [vmem:[%s1276_s17 + $0x178] sm:$0xff] %v442_v33  ;;  %v474_v33 = vmax.f32 %v218_v28, 0.0  ;;  %v250_v28 = vld [vmem:[%s1263_s24 + $0x378] sm:$0xff] }
  0x5c   : > { %699 = vst [vmem:[%s1276_s17 + $0x180] sm:$0xff] %v443_v35  ;;  %v475_v35 = vmax.f32 %v219_v30, 0.0  ;;  %v251_v30 = vld [vmem:[%s1263_s24 + $0x380] sm:$0xff] }
  0x5d   : > { %700 = vst [vmem:[%s1276_s17 + $0x188] sm:$0xff] %v444_v37  ;;  %v476_v37 = vmax.f32 %v220_v32, 0.0  ;;  %v252_v32 = vld [vmem:[%s1263_s24 + $0x388] sm:$0xff] }
  0x5e   : > { %701 = vst [vmem:[%s1276_s17 + $0x190] sm:$0xff] %v445_v39  ;;  %v477_v39 = vmax.f32 %v221_v34, 0.0  ;;  %v253_v34 = vld [vmem:[%s1263_s24 + $0x390] sm:$0xff] }
  0x5f   : > { %702 = vst [vmem:[%s1276_s17 + $0x198] sm:$0xff] %v446_v41  ;;  %v478_v41 = vmax.f32 %v222_v36, 0.0  ;;  %v254_v36 = vld [vmem:[%s1263_s24 + $0x398] sm:$0xff] }
  0x60   : > { %703 = vst [vmem:[%s1276_s17 + $0x1a0] sm:$0xff] %v447_v43  ;;  %v479_v43 = vmax.f32 %v223_v38, 0.0  ;;  %v255_v38 = vld [vmem:[%s1263_s24 + $0x3a0] sm:$0xff] }
  0x61   : > { %704 = vst [vmem:[%s1276_s17 + $0x1a8] sm:$0xff] %v448_v45  ;;  %v480_v45 = vmax.f32 %v224_v40, 0.0  ;;  %v256_v40 = vld [vmem:[%s1263_s24 + $0x3a8] sm:$0xff] }
  0x62   : > { %705 = vst [vmem:[%s1276_s17 + $0x1b0] sm:$0xff] %v449_v47  ;;  %v481_v47 = vmax.f32 %v225_v42, 0.0  ;;  %v257_v42 = vld [vmem:[%s1263_s24 + $0x3b0] sm:$0xff] }
  0x63   : > { %706 = vst [vmem:[%s1276_s17 + $0x1b8] sm:$0xff] %v450_v49  ;;  %v482_v49 = vmax.f32 %v226_v44, 0.0  ;;  %v258_v44 = vld [vmem:[%s1263_s24 + $0x3b8] sm:$0xff] }
  0x64   : > { %707 = vst [vmem:[%s1276_s17 + $0x1c0] sm:$0xff] %v451_v51  ;;  %v483_v51 = vmax.f32 %v227_v46, 0.0  ;;  %v259_v46 = vld [vmem:[%s1263_s24 + $0x3c0] sm:$0xff] }
  0x65   : > { %708 = vst [vmem:[%s1276_s17 + $0x1c8] sm:$0xff] %v452_v53  ;;  %v484_v53 = vmax.f32 %v228_v48, 0.0  ;;  %v260_v48 = vld [vmem:[%s1263_s24 + $0x3c8] sm:$0xff] }
  0x66   : > { %709 = vst [vmem:[%s1276_s17 + $0x1d0] sm:$0xff] %v453_v55  ;;  %v485_v55 = vmax.f32 %v229_v50, 0.0  ;;  %v261_v50 = vld [vmem:[%s1263_s24 + $0x3d0] sm:$0xff] }
  0x67   : > { %710 = vst [vmem:[%s1276_s17 + $0x1d8] sm:$0xff] %v454_v57  ;;  %v486_v57 = vmax.f32 %v230_v52, 0.0  ;;  %v262_v52 = vld [vmem:[%s1263_s24 + $0x3d8] sm:$0xff] }
  0x68   : > { %711 = vst [vmem:[%s1276_s17 + $0x1e0] sm:$0xff] %v455_v59  ;;  %v487_v59 = vmax.f32 %v231_v54, 0.0  ;;  %v263_v54 = vld [vmem:[%s1263_s24 + $0x3e0] sm:$0xff] }
  0x69   : > { %712 = vst [vmem:[%s1276_s17 + $0x1e8] sm:$0xff] %v456_v61  ;;  %v488_v61 = vmax.f32 %v232_v56, 0.0  ;;  %v264_v56 = vld [vmem:[%s1263_s24 + $0x3e8] sm:$0xff] }
  0x6a   : > { %713 = vst [vmem:[%s1276_s17 + $0x1f0] sm:$0xff] %v457_v63  ;;  %v489_v63 = vmax.f32 %v233_v58, 0.0  ;;  %v265_v58 = vld [vmem:[%s1263_s24 + $0x3f0] sm:$0xff] }
  0x6b   : > { %714 = vst [vmem:[%s1276_s17 + $0x1f8] sm:$0xff] %v458_v1  ;;  %v490_v1 = vmax.f32 %v234_v60, 0.0  ;;  %v266_v60 = vld [vmem:[%s1263_s24 + $0x3f8] sm:$0xff] }
  0x6c   : > { %715 = vst [vmem:[%s1276_s17 + $0x200] sm:$0xff] %v459_v3  ;;  %v491_v3 = vmax.f32 %v235_v62, 0.0  ;;  %v267_v62 = vld [vmem:[%s1263_s24 + $0x400] sm:$0xff] }
  0x6d   : > { %716 = vst [vmem:[%s1276_s17 + $0x208] sm:$0xff] %v460_v5  ;;  %v492_v5 = vmax.f32 %v236_v0, 0.0  ;;  %v268_v0 = vld [vmem:[%s1263_s24 + $0x408] sm:$0xff] }
  0x6e   : > { %717 = vst [vmem:[%s1276_s17 + $0x210] sm:$0xff] %v461_v7  ;;  %v493_v7 = vmax.f32 %v237_v2, 0.0  ;;  %v269_v2 = vld [vmem:[%s1263_s24 + $0x410] sm:$0xff] }
  0x6f   : > { %718 = vst [vmem:[%s1276_s17 + $0x218] sm:$0xff] %v462_v9  ;;  %v494_v9 = vmax.f32 %v238_v4, 0.0  ;;  %v270_v4 = vld [vmem:[%s1263_s24 + $0x418] sm:$0xff] }
  0x70   : > { %719 = vst [vmem:[%s1276_s17 + $0x220] sm:$0xff] %v463_v11  ;;  %v495_v11 = vmax.f32 %v239_v6, 0.0  ;;  %v271_v6 = vld [vmem:[%s1263_s24 + $0x420] sm:$0xff] }
  0x71   : > { %720 = vst [vmem:[%s1276_s17 + $0x228] sm:$0xff] %v464_v13  ;;  %v496_v13 = vmax.f32 %v240_v8, 0.0  ;;  %v272_v8 = vld [vmem:[%s1263_s24 + $0x428] sm:$0xff] }
  0x72   : > { %721 = vst [vmem:[%s1276_s17 + $0x230] sm:$0xff] %v465_v15  ;;  %v497_v15 = vmax.f32 %v241_v10, 0.0  ;;  %v273_v10 = vld [vmem:[%s1263_s24 + $0x430] sm:$0xff] }
  0x73   : > { %722 = vst [vmem:[%s1276_s17 + $0x238] sm:$0xff] %v466_v17  ;;  %v498_v17 = vmax.f32 %v242_v12, 0.0  ;;  %v274_v12 = vld [vmem:[%s1263_s24 + $0x438] sm:$0xff] }
  0x74   : > { %723 = vst [vmem:[%s1276_s17 + $0x240] sm:$0xff] %v467_v19  ;;  %v499_v19 = vmax.f32 %v243_v14, 0.0  ;;  %v275_v14 = vld [vmem:[%s1263_s24 + $0x440] sm:$0xff] }
  0x75   : > { %724 = vst [vmem:[%s1276_s17 + $0x248] sm:$0xff] %v468_v21  ;;  %v500_v21 = vmax.f32 %v244_v16, 0.0  ;;  %v276_v16 = vld [vmem:[%s1263_s24 + $0x448] sm:$0xff] }
  0x76   : > { %725 = vst [vmem:[%s1276_s17 + $0x250] sm:$0xff] %v469_v23  ;;  %v501_v23 = vmax.f32 %v245_v18, 0.0  ;;  %v277_v18 = vld [vmem:[%s1263_s24 + $0x450] sm:$0xff] }
  0x77   : > { %726 = vst [vmem:[%s1276_s17 + $0x258] sm:$0xff] %v470_v25  ;;  %v502_v25 = vmax.f32 %v246_v20, 0.0  ;;  %v278_v20 = vld [vmem:[%s1263_s24 + $0x458] sm:$0xff] }
  0x78   : > { %727 = vst [vmem:[%s1276_s17 + $0x260] sm:$0xff] %v471_v27  ;;  %v503_v27 = vmax.f32 %v247_v22, 0.0  ;;  %v279_v22 = vld [vmem:[%s1263_s24 + $0x460] sm:$0xff] }
  0x79   : > { %728 = vst [vmem:[%s1276_s17 + $0x268] sm:$0xff] %v472_v29  ;;  %v504_v29 = vmax.f32 %v248_v24, 0.0  ;;  %v280_v24 = vld [vmem:[%s1263_s24 + $0x468] sm:$0xff] }
  0x7a   : > { %729 = vst [vmem:[%s1276_s17 + $0x270] sm:$0xff] %v473_v31  ;;  %v505_v31 = vmax.f32 %v249_v26, 0.0  ;;  %v281_v26 = vld [vmem:[%s1263_s24 + $0x470] sm:$0xff] }
  0x7b   : > { %730 = vst [vmem:[%s1276_s17 + $0x278] sm:$0xff] %v474_v33  ;;  %v506_v33 = vmax.f32 %v250_v28, 0.0  ;;  %v282_v28 = vld [vmem:[%s1263_s24 + $0x478] sm:$0xff] }
  0x7c   : > { %731 = vst [vmem:[%s1276_s17 + $0x280] sm:$0xff] %v475_v35  ;;  %v507_v35 = vmax.f32 %v251_v30, 0.0  ;;  %v283_v30 = vld [vmem:[%s1263_s24 + $0x480] sm:$0xff] }
  0x7d   : > { %732 = vst [vmem:[%s1276_s17 + $0x288] sm:$0xff] %v476_v37  ;;  %v508_v37 = vmax.f32 %v252_v32, 0.0  ;;  %v284_v32 = vld [vmem:[%s1263_s24 + $0x488] sm:$0xff] }
  0x7e   : > { %733 = vst [vmem:[%s1276_s17 + $0x290] sm:$0xff] %v477_v39  ;;  %v509_v39 = vmax.f32 %v253_v34, 0.0  ;;  %v285_v34 = vld [vmem:[%s1263_s24 + $0x490] sm:$0xff] }
  0x7f   : > { %734 = vst [vmem:[%s1276_s17 + $0x298] sm:$0xff] %v478_v41  ;;  %v510_v41 = vmax.f32 %v254_v36, 0.0  ;;  %v286_v36 = vld [vmem:[%s1263_s24 + $0x498] sm:$0xff] }
  0x80   : > { %735 = vst [vmem:[%s1276_s17 + $0x2a0] sm:$0xff] %v479_v43  ;;  %v511_v43 = vmax.f32 %v255_v38, 0.0  ;;  %v287_v38 = vld [vmem:[%s1263_s24 + $0x4a0] sm:$0xff] }
  0x81   : > { %736 = vst [vmem:[%s1276_s17 + $0x2a8] sm:$0xff] %v480_v45  ;;  %v512_v45 = vmax.f32 %v256_v40, 0.0  ;;  %v288_v40 = vld [vmem:[%s1263_s24 + $0x4a8] sm:$0xff] }
  0x82   : > { %737 = vst [vmem:[%s1276_s17 + $0x2b0] sm:$0xff] %v481_v47  ;;  %v513_v47 = vmax.f32 %v257_v42, 0.0  ;;  %v289_v42 = vld [vmem:[%s1263_s24 + $0x4b0] sm:$0xff] }
  0x83   : > { %738 = vst [vmem:[%s1276_s17 + $0x2b8] sm:$0xff] %v482_v49  ;;  %v514_v49 = vmax.f32 %v258_v44, 0.0  ;;  %v290_v44 = vld [vmem:[%s1263_s24 + $0x4b8] sm:$0xff] }
  0x84   : > { %739 = vst [vmem:[%s1276_s17 + $0x2c0] sm:$0xff] %v483_v51  ;;  %v515_v51 = vmax.f32 %v259_v46, 0.0  ;;  %v291_v46 = vld [vmem:[%s1263_s24 + $0x4c0] sm:$0xff] }
  0x85   : > { %740 = vst [vmem:[%s1276_s17 + $0x2c8] sm:$0xff] %v484_v53  ;;  %v516_v53 = vmax.f32 %v260_v48, 0.0  ;;  %v292_v48 = vld [vmem:[%s1263_s24 + $0x4c8] sm:$0xff] }
  0x86   : > { %741 = vst [vmem:[%s1276_s17 + $0x2d0] sm:$0xff] %v485_v55  ;;  %v517_v55 = vmax.f32 %v261_v50, 0.0  ;;  %v293_v50 = vld [vmem:[%s1263_s24 + $0x4d0] sm:$0xff] }
  0x87   : > { %742 = vst [vmem:[%s1276_s17 + $0x2d8] sm:$0xff] %v486_v57  ;;  %v518_v57 = vmax.f32 %v262_v52, 0.0  ;;  %v294_v52 = vld [vmem:[%s1263_s24 + $0x4d8] sm:$0xff] }
  0x88   : > { %743 = vst [vmem:[%s1276_s17 + $0x2e0] sm:$0xff] %v487_v59  ;;  %v519_v59 = vmax.f32 %v263_v54, 0.0  ;;  %v295_v54 = vld [vmem:[%s1263_s24 + $0x4e0] sm:$0xff] }
  0x89   : > { %744 = vst [vmem:[%s1276_s17 + $0x2e8] sm:$0xff] %v488_v61  ;;  %v520_v61 = vmax.f32 %v264_v56, 0.0  ;;  %v296_v56 = vld [vmem:[%s1263_s24 + $0x4e8] sm:$0xff] }
  0x8a   : > { %745 = vst [vmem:[%s1276_s17 + $0x2f0] sm:$0xff] %v489_v63  ;;  %v521_v63 = vmax.f32 %v265_v58, 0.0  ;;  %v297_v58 = vld [vmem:[%s1263_s24 + $0x4f0] sm:$0xff] }
  0x8b   : > { %746 = vst [vmem:[%s1276_s17 + $0x2f8] sm:$0xff] %v490_v1  ;;  %v522_v1 = vmax.f32 %v266_v60, 0.0  ;;  %v298_v60 = vld [vmem:[%s1263_s24 + $0x4f8] sm:$0xff] }
  0x8c   : > { %747 = vst [vmem:[%s1276_s17 + $0x300] sm:$0xff] %v491_v3  ;;  %v523_v3 = vmax.f32 %v267_v62, 0.0  ;;  %v299_v62 = vld [vmem:[%s1263_s24 + $0x500] sm:$0xff] }
  0x8d   : > { %748 = vst [vmem:[%s1276_s17 + $0x308] sm:$0xff] %v492_v5  ;;  %v524_v5 = vmax.f32 %v268_v0, 0.0  ;;  %v300_v0 = vld [vmem:[%s1263_s24 + $0x508] sm:$0xff] }
  0x8e   : > { %749 = vst [vmem:[%s1276_s17 + $0x310] sm:$0xff] %v493_v7  ;;  %v525_v7 = vmax.f32 %v269_v2, 0.0  ;;  %v301_v2 = vld [vmem:[%s1263_s24 + $0x510] sm:$0xff] }
  0x8f   : > { %750 = vst [vmem:[%s1276_s17 + $0x318] sm:$0xff] %v494_v9  ;;  %v526_v9 = vmax.f32 %v270_v4, 0.0  ;;  %v302_v4 = vld [vmem:[%s1263_s24 + $0x518] sm:$0xff] }
  0x90   : > { %751 = vst [vmem:[%s1276_s17 + $0x320] sm:$0xff] %v495_v11  ;;  %v527_v11 = vmax.f32 %v271_v6, 0.0  ;;  %v303_v6 = vld [vmem:[%s1263_s24 + $0x520] sm:$0xff] }
  0x91   : > { %752 = vst [vmem:[%s1276_s17 + $0x328] sm:$0xff] %v496_v13  ;;  %v528_v13 = vmax.f32 %v272_v8, 0.0  ;;  %v304_v8 = vld [vmem:[%s1263_s24 + $0x528] sm:$0xff] }
  0x92   : > { %753 = vst [vmem:[%s1276_s17 + $0x330] sm:$0xff] %v497_v15  ;;  %v529_v15 = vmax.f32 %v273_v10, 0.0  ;;  %v305_v10 = vld [vmem:[%s1263_s24 + $0x530] sm:$0xff] }
  0x93   : > { %754 = vst [vmem:[%s1276_s17 + $0x338] sm:$0xff] %v498_v17  ;;  %v530_v17 = vmax.f32 %v274_v12, 0.0  ;;  %v306_v12 = vld [vmem:[%s1263_s24 + $0x538] sm:$0xff] }
  0x94   : > { %755 = vst [vmem:[%s1276_s17 + $0x340] sm:$0xff] %v499_v19  ;;  %v531_v19 = vmax.f32 %v275_v14, 0.0  ;;  %v307_v14 = vld [vmem:[%s1263_s24 + $0x540] sm:$0xff] }
  0x95   : > { %756 = vst [vmem:[%s1276_s17 + $0x348] sm:$0xff] %v500_v21  ;;  %v532_v21 = vmax.f32 %v276_v16, 0.0  ;;  %v308_v16 = vld [vmem:[%s1263_s24 + $0x548] sm:$0xff] }
  0x96   : > { %757 = vst [vmem:[%s1276_s17 + $0x350] sm:$0xff] %v501_v23  ;;  %v533_v23 = vmax.f32 %v277_v18, 0.0  ;;  %v309_v18 = vld [vmem:[%s1263_s24 + $0x550] sm:$0xff] }
  0x97   : > { %758 = vst [vmem:[%s1276_s17 + $0x358] sm:$0xff] %v502_v25  ;;  %v534_v25 = vmax.f32 %v278_v20, 0.0  ;;  %v310_v20 = vld [vmem:[%s1263_s24 + $0x558] sm:$0xff] }
  0x98   : > { %759 = vst [vmem:[%s1276_s17 + $0x360] sm:$0xff] %v503_v27  ;;  %v535_v27 = vmax.f32 %v279_v22, 0.0  ;;  %v311_v22 = vld [vmem:[%s1263_s24 + $0x560] sm:$0xff] }
  0x99   : > { %760 = vst [vmem:[%s1276_s17 + $0x368] sm:$0xff] %v504_v29  ;;  %v536_v29 = vmax.f32 %v280_v24, 0.0  ;;  %v312_v24 = vld [vmem:[%s1263_s24 + $0x568] sm:$0xff] }
  0x9a   : > { %761 = vst [vmem:[%s1276_s17 + $0x370] sm:$0xff] %v505_v31  ;;  %v537_v31 = vmax.f32 %v281_v26, 0.0  ;;  %v313_v26 = vld [vmem:[%s1263_s24 + $0x570] sm:$0xff] }
  0x9b   : > { %762 = vst [vmem:[%s1276_s17 + $0x378] sm:$0xff] %v506_v33  ;;  %v538_v33 = vmax.f32 %v282_v28, 0.0  ;;  %v314_v28 = vld [vmem:[%s1263_s24 + $0x578] sm:$0xff] }
  0x9c   : > { %763 = vst [vmem:[%s1276_s17 + $0x380] sm:$0xff] %v507_v35  ;;  %v539_v35 = vmax.f32 %v283_v30, 0.0  ;;  %v315_v30 = vld [vmem:[%s1263_s24 + $0x580] sm:$0xff] }
  0x9d   : > { %764 = vst [vmem:[%s1276_s17 + $0x388] sm:$0xff] %v508_v37  ;;  %v540_v37 = vmax.f32 %v284_v32, 0.0  ;;  %v316_v32 = vld [vmem:[%s1263_s24 + $0x588] sm:$0xff] }
  0x9e   : > { %765 = vst [vmem:[%s1276_s17 + $0x390] sm:$0xff] %v509_v39  ;;  %v541_v39 = vmax.f32 %v285_v34, 0.0  ;;  %v317_v34 = vld [vmem:[%s1263_s24 + $0x590] sm:$0xff] }
  0x9f   : > { %766 = vst [vmem:[%s1276_s17 + $0x398] sm:$0xff] %v510_v41  ;;  %v542_v41 = vmax.f32 %v286_v36, 0.0  ;;  %v318_v36 = vld [vmem:[%s1263_s24 + $0x598] sm:$0xff] }
  0xa0   : > { %767 = vst [vmem:[%s1276_s17 + $0x3a0] sm:$0xff] %v511_v43  ;;  %v543_v43 = vmax.f32 %v287_v38, 0.0  ;;  %v319_v38 = vld [vmem:[%s1263_s24 + $0x5a0] sm:$0xff] }
  0xa1   : > { %768 = vst [vmem:[%s1276_s17 + $0x3a8] sm:$0xff] %v512_v45  ;;  %v544_v45 = vmax.f32 %v288_v40, 0.0  ;;  %v320_v40 = vld [vmem:[%s1263_s24 + $0x5a8] sm:$0xff] }
  0xa2   : > { %769 = vst [vmem:[%s1276_s17 + $0x3b0] sm:$0xff] %v513_v47  ;;  %v545_v47 = vmax.f32 %v289_v42, 0.0  ;;  %v321_v42 = vld [vmem:[%s1263_s24 + $0x5b0] sm:$0xff] }
  0xa3   : > { %770 = vst [vmem:[%s1276_s17 + $0x3b8] sm:$0xff] %v514_v49  ;;  %v546_v49 = vmax.f32 %v290_v44, 0.0  ;;  %v322_v44 = vld [vmem:[%s1263_s24 + $0x5b8] sm:$0xff] }
  0xa4   : > { %771 = vst [vmem:[%s1276_s17 + $0x3c0] sm:$0xff] %v515_v51  ;;  %v547_v51 = vmax.f32 %v291_v46, 0.0  ;;  %v323_v46 = vld [vmem:[%s1263_s24 + $0x5c0] sm:$0xff] }
  0xa5   : > { %772 = vst [vmem:[%s1276_s17 + $0x3c8] sm:$0xff] %v516_v53  ;;  %v548_v53 = vmax.f32 %v292_v48, 0.0  ;;  %v324_v48 = vld [vmem:[%s1263_s24 + $0x5c8] sm:$0xff] }
  0xa6   : > { %773 = vst [vmem:[%s1276_s17 + $0x3d0] sm:$0xff] %v517_v55  ;;  %v549_v55 = vmax.f32 %v293_v50, 0.0  ;;  %v325_v50 = vld [vmem:[%s1263_s24 + $0x5d0] sm:$0xff] }
  0xa7   : > { %774 = vst [vmem:[%s1276_s17 + $0x3d8] sm:$0xff] %v518_v57  ;;  %v550_v57 = vmax.f32 %v294_v52, 0.0  ;;  %v326_v52 = vld [vmem:[%s1263_s24 + $0x5d8] sm:$0xff] }
  0xa8   : > { %775 = vst [vmem:[%s1276_s17 + $0x3e0] sm:$0xff] %v519_v59  ;;  %v551_v59 = vmax.f32 %v295_v54, 0.0  ;;  %v327_v54 = vld [vmem:[%s1263_s24 + $0x5e0] sm:$0xff] }
  0xa9   : > { %776 = vst [vmem:[%s1276_s17 + $0x3e8] sm:$0xff] %v520_v61  ;;  %v552_v61 = vmax.f32 %v296_v56, 0.0  ;;  %v328_v56 = vld [vmem:[%s1263_s24 + $0x5e8] sm:$0xff] }
  0xaa   : > { %777 = vst [vmem:[%s1276_s17 + $0x3f0] sm:$0xff] %v521_v63  ;;  %v553_v63 = vmax.f32 %v297_v58, 0.0  ;;  %v329_v58 = vld [vmem:[%s1263_s24 + $0x5f0] sm:$0xff] }
  0xab   : > { %778 = vst [vmem:[%s1276_s17 + $0x3f8] sm:$0xff] %v522_v1  ;;  %v554_v1 = vmax.f32 %v298_v60, 0.0  ;;  %v330_v60 = vld [vmem:[%s1263_s24 + $0x5f8] sm:$0xff] }
  0xac   : > { %779 = vst [vmem:[%s1276_s17 + $0x400] sm:$0xff] %v523_v3  ;;  %v555_v3 = vmax.f32 %v299_v62, 0.0  ;;  %v331_v62 = vld [vmem:[%s1263_s24 + $0x600] sm:$0xff] }
  0xad   : > { %780 = vst [vmem:[%s1276_s17 + $0x408] sm:$0xff] %v524_v5  ;;  %v556_v5 = vmax.f32 %v300_v0, 0.0  ;;  %v332_v0 = vld [vmem:[%s1263_s24 + $0x608] sm:$0xff] }
  0xae   : > { %781 = vst [vmem:[%s1276_s17 + $0x410] sm:$0xff] %v525_v7  ;;  %v557_v7 = vmax.f32 %v301_v2, 0.0  ;;  %v333_v2 = vld [vmem:[%s1263_s24 + $0x610] sm:$0xff] }
  0xaf   : > { %782 = vst [vmem:[%s1276_s17 + $0x418] sm:$0xff] %v526_v9  ;;  %v558_v9 = vmax.f32 %v302_v4, 0.0  ;;  %v334_v4 = vld [vmem:[%s1263_s24 + $0x618] sm:$0xff] }
  0xb0   : > { %783 = vst [vmem:[%s1276_s17 + $0x420] sm:$0xff] %v527_v11  ;;  %v559_v11 = vmax.f32 %v303_v6, 0.0  ;;  %v335_v6 = vld [vmem:[%s1263_s24 + $0x620] sm:$0xff] }
  0xb1   : > { %784 = vst [vmem:[%s1276_s17 + $0x428] sm:$0xff] %v528_v13  ;;  %v560_v13 = vmax.f32 %v304_v8, 0.0  ;;  %v336_v8 = vld [vmem:[%s1263_s24 + $0x628] sm:$0xff] }
  0xb2   : > { %785 = vst [vmem:[%s1276_s17 + $0x430] sm:$0xff] %v529_v15  ;;  %v561_v15 = vmax.f32 %v305_v10, 0.0  ;;  %v337_v10 = vld [vmem:[%s1263_s24 + $0x630] sm:$0xff] }
  0xb3   : > { %786 = vst [vmem:[%s1276_s17 + $0x438] sm:$0xff] %v530_v17  ;;  %v562_v17 = vmax.f32 %v306_v12, 0.0  ;;  %v338_v12 = vld [vmem:[%s1263_s24 + $0x638] sm:$0xff] }
  0xb4   : > { %787 = vst [vmem:[%s1276_s17 + $0x440] sm:$0xff] %v531_v19  ;;  %v563_v19 = vmax.f32 %v307_v14, 0.0  ;;  %v339_v14 = vld [vmem:[%s1263_s24 + $0x640] sm:$0xff] }
  0xb5   : > { %788 = vst [vmem:[%s1276_s17 + $0x448] sm:$0xff] %v532_v21  ;;  %v564_v21 = vmax.f32 %v308_v16, 0.0  ;;  %v340_v16 = vld [vmem:[%s1263_s24 + $0x648] sm:$0xff] }
  0xb6   : > { %789 = vst [vmem:[%s1276_s17 + $0x450] sm:$0xff] %v533_v23  ;;  %v565_v23 = vmax.f32 %v309_v18, 0.0  ;;  %v341_v18 = vld [vmem:[%s1263_s24 + $0x650] sm:$0xff] }
  0xb7   : > { %790 = vst [vmem:[%s1276_s17 + $0x458] sm:$0xff] %v534_v25  ;;  %v566_v25 = vmax.f32 %v310_v20, 0.0  ;;  %v342_v20 = vld [vmem:[%s1263_s24 + $0x658] sm:$0xff] }
  0xb8   : > { %791 = vst [vmem:[%s1276_s17 + $0x460] sm:$0xff] %v535_v27  ;;  %v567_v27 = vmax.f32 %v311_v22, 0.0  ;;  %v343_v22 = vld [vmem:[%s1263_s24 + $0x660] sm:$0xff] }
  0xb9   : > { %792 = vst [vmem:[%s1276_s17 + $0x468] sm:$0xff] %v536_v29  ;;  %v568_v29 = vmax.f32 %v312_v24, 0.0  ;;  %v344_v24 = vld [vmem:[%s1263_s24 + $0x668] sm:$0xff] }
  0xba   : > { %793 = vst [vmem:[%s1276_s17 + $0x470] sm:$0xff] %v537_v31  ;;  %v569_v31 = vmax.f32 %v313_v26, 0.0  ;;  %v345_v26 = vld [vmem:[%s1263_s24 + $0x670] sm:$0xff] }
  0xbb   : > { %794 = vst [vmem:[%s1276_s17 + $0x478] sm:$0xff] %v538_v33  ;;  %v570_v33 = vmax.f32 %v314_v28, 0.0  ;;  %v346_v28 = vld [vmem:[%s1263_s24 + $0x678] sm:$0xff] }
  0xbc   : > { %795 = vst [vmem:[%s1276_s17 + $0x480] sm:$0xff] %v539_v35  ;;  %v571_v35 = vmax.f32 %v315_v30, 0.0  ;;  %v347_v30 = vld [vmem:[%s1263_s24 + $0x680] sm:$0xff] }
  0xbd   : > { %796 = vst [vmem:[%s1276_s17 + $0x488] sm:$0xff] %v540_v37  ;;  %v572_v37 = vmax.f32 %v316_v32, 0.0  ;;  %v348_v32 = vld [vmem:[%s1263_s24 + $0x688] sm:$0xff] }
  0xbe   : > { %797 = vst [vmem:[%s1276_s17 + $0x490] sm:$0xff] %v541_v39  ;;  %v573_v39 = vmax.f32 %v317_v34, 0.0  ;;  %v349_v34 = vld [vmem:[%s1263_s24 + $0x690] sm:$0xff] }
  0xbf   : > { %798 = vst [vmem:[%s1276_s17 + $0x498] sm:$0xff] %v542_v41  ;;  %v574_v41 = vmax.f32 %v318_v36, 0.0  ;;  %v350_v36 = vld [vmem:[%s1263_s24 + $0x698] sm:$0xff] }
  0xc0   : > { %799 = vst [vmem:[%s1276_s17 + $0x4a0] sm:$0xff] %v543_v43  ;;  %v575_v43 = vmax.f32 %v319_v38, 0.0  ;;  %v351_v38 = vld [vmem:[%s1263_s24 + $0x6a0] sm:$0xff] }
  0xc1   : > { %800 = vst [vmem:[%s1276_s17 + $0x4a8] sm:$0xff] %v544_v45  ;;  %v576_v45 = vmax.f32 %v320_v40, 0.0  ;;  %v352_v40 = vld [vmem:[%s1263_s24 + $0x6a8] sm:$0xff] }
  0xc2   : > { %801 = vst [vmem:[%s1276_s17 + $0x4b0] sm:$0xff] %v545_v47  ;;  %v577_v47 = vmax.f32 %v321_v42, 0.0  ;;  %v353_v42 = vld [vmem:[%s1263_s24 + $0x6b0] sm:$0xff] }
  0xc3   : > { %802 = vst [vmem:[%s1276_s17 + $0x4b8] sm:$0xff] %v546_v49  ;;  %v578_v49 = vmax.f32 %v322_v44, 0.0  ;;  %v354_v44 = vld [vmem:[%s1263_s24 + $0x6b8] sm:$0xff] }
  0xc4   : > { %803 = vst [vmem:[%s1276_s17 + $0x4c0] sm:$0xff] %v547_v51  ;;  %v579_v51 = vmax.f32 %v323_v46, 0.0  ;;  %v355_v46 = vld [vmem:[%s1263_s24 + $0x6c0] sm:$0xff] }
  0xc5   : > { %804 = vst [vmem:[%s1276_s17 + $0x4c8] sm:$0xff] %v548_v53  ;;  %v580_v53 = vmax.f32 %v324_v48, 0.0  ;;  %v356_v48 = vld [vmem:[%s1263_s24 + $0x6c8] sm:$0xff] }
  0xc6   : > { %805 = vst [vmem:[%s1276_s17 + $0x4d0] sm:$0xff] %v549_v55  ;;  %v581_v55 = vmax.f32 %v325_v50, 0.0  ;;  %v357_v50 = vld [vmem:[%s1263_s24 + $0x6d0] sm:$0xff] }
  0xc7   : > { %806 = vst [vmem:[%s1276_s17 + $0x4d8] sm:$0xff] %v550_v57  ;;  %v582_v57 = vmax.f32 %v326_v52, 0.0  ;;  %v358_v52 = vld [vmem:[%s1263_s24 + $0x6d8] sm:$0xff] }
  0xc8   : > { %807 = vst [vmem:[%s1276_s17 + $0x4e0] sm:$0xff] %v551_v59  ;;  %v583_v59 = vmax.f32 %v327_v54, 0.0  ;;  %v359_v54 = vld [vmem:[%s1263_s24 + $0x6e0] sm:$0xff] }
  0xc9   : > { %808 = vst [vmem:[%s1276_s17 + $0x4e8] sm:$0xff] %v552_v61  ;;  %v584_v61 = vmax.f32 %v328_v56, 0.0  ;;  %v360_v56 = vld [vmem:[%s1263_s24 + $0x6e8] sm:$0xff] }
  0xca   : > { %809 = vst [vmem:[%s1276_s17 + $0x4f0] sm:$0xff] %v553_v63  ;;  %v585_v63 = vmax.f32 %v329_v58, 0.0  ;;  %v361_v58 = vld [vmem:[%s1263_s24 + $0x6f0] sm:$0xff] }
  0xcb   : > { %810 = vst [vmem:[%s1276_s17 + $0x4f8] sm:$0xff] %v554_v1  ;;  %v586_v1 = vmax.f32 %v330_v60, 0.0  ;;  %v362_v60 = vld [vmem:[%s1263_s24 + $0x6f8] sm:$0xff] }
  0xcc   : > { %811 = vst [vmem:[%s1276_s17 + $0x500] sm:$0xff] %v555_v3  ;;  %v587_v3 = vmax.f32 %v331_v62, 0.0  ;;  %v363_v62 = vld [vmem:[%s1263_s24 + $0x700] sm:$0xff] }
  0xcd   : > { %812 = vst [vmem:[%s1276_s17 + $0x508] sm:$0xff] %v556_v5  ;;  %v588_v5 = vmax.f32 %v332_v0, 0.0  ;;  %v364_v0 = vld [vmem:[%s1263_s24 + $0x708] sm:$0xff] }
  0xce   : > { %813 = vst [vmem:[%s1276_s17 + $0x510] sm:$0xff] %v557_v7  ;;  %v589_v7 = vmax.f32 %v333_v2, 0.0  ;;  %v365_v2 = vld [vmem:[%s1263_s24 + $0x710] sm:$0xff] }
  0xcf   : > { %814 = vst [vmem:[%s1276_s17 + $0x518] sm:$0xff] %v558_v9  ;;  %v590_v9 = vmax.f32 %v334_v4, 0.0  ;;  %v366_v4 = vld [vmem:[%s1263_s24 + $0x718] sm:$0xff] }
  0xd0   : > { %815 = vst [vmem:[%s1276_s17 + $0x520] sm:$0xff] %v559_v11  ;;  %v591_v11 = vmax.f32 %v335_v6, 0.0  ;;  %v367_v6 = vld [vmem:[%s1263_s24 + $0x720] sm:$0xff] }
  0xd1   : > { %816 = vst [vmem:[%s1276_s17 + $0x528] sm:$0xff] %v560_v13  ;;  %v592_v13 = vmax.f32 %v336_v8, 0.0  ;;  %v368_v8 = vld [vmem:[%s1263_s24 + $0x728] sm:$0xff] }
  0xd2   : > { %817 = vst [vmem:[%s1276_s17 + $0x530] sm:$0xff] %v561_v15  ;;  %v593_v15 = vmax.f32 %v337_v10, 0.0  ;;  %v369_v10 = vld [vmem:[%s1263_s24 + $0x730] sm:$0xff] }
  0xd3   : > { %818 = vst [vmem:[%s1276_s17 + $0x538] sm:$0xff] %v562_v17  ;;  %v594_v17 = vmax.f32 %v338_v12, 0.0  ;;  %v370_v12 = vld [vmem:[%s1263_s24 + $0x738] sm:$0xff] }
  0xd4   : > { %819 = vst [vmem:[%s1276_s17 + $0x540] sm:$0xff] %v563_v19  ;;  %v595_v19 = vmax.f32 %v339_v14, 0.0  ;;  %v371_v14 = vld [vmem:[%s1263_s24 + $0x740] sm:$0xff] }
  0xd5   : > { %820 = vst [vmem:[%s1276_s17 + $0x548] sm:$0xff] %v564_v21  ;;  %v596_v21 = vmax.f32 %v340_v16, 0.0  ;;  %v372_v16 = vld [vmem:[%s1263_s24 + $0x748] sm:$0xff] }
  0xd6   : > { %821 = vst [vmem:[%s1276_s17 + $0x550] sm:$0xff] %v565_v23  ;;  %v597_v23 = vmax.f32 %v341_v18, 0.0  ;;  %v373_v18 = vld [vmem:[%s1263_s24 + $0x750] sm:$0xff] }
  0xd7   : > { %822 = vst [vmem:[%s1276_s17 + $0x558] sm:$0xff] %v566_v25  ;;  %v598_v25 = vmax.f32 %v342_v20, 0.0  ;;  %v374_v20 = vld [vmem:[%s1263_s24 + $0x758] sm:$0xff] }
  0xd8   : > { %823 = vst [vmem:[%s1276_s17 + $0x560] sm:$0xff] %v567_v27  ;;  %v599_v27 = vmax.f32 %v343_v22, 0.0  ;;  %v375_v22 = vld [vmem:[%s1263_s24 + $0x760] sm:$0xff] }
  0xd9   : > { %824 = vst [vmem:[%s1276_s17 + $0x568] sm:$0xff] %v568_v29  ;;  %v600_v29 = vmax.f32 %v344_v24, 0.0  ;;  %v376_v24 = vld [vmem:[%s1263_s24 + $0x768] sm:$0xff] }
  0xda   : > { %825 = vst [vmem:[%s1276_s17 + $0x570] sm:$0xff] %v569_v31  ;;  %v601_v31 = vmax.f32 %v345_v26, 0.0  ;;  %v377_v26 = vld [vmem:[%s1263_s24 + $0x770] sm:$0xff] }
  0xdb   : > { %826 = vst [vmem:[%s1276_s17 + $0x578] sm:$0xff] %v570_v33  ;;  %v602_v33 = vmax.f32 %v346_v28, 0.0  ;;  %v378_v28 = vld [vmem:[%s1263_s24 + $0x778] sm:$0xff] }
  0xdc   : > { %827 = vst [vmem:[%s1276_s17 + $0x580] sm:$0xff] %v571_v35  ;;  %v603_v35 = vmax.f32 %v347_v30, 0.0  ;;  %v379_v30 = vld [vmem:[%s1263_s24 + $0x780] sm:$0xff] }
  0xdd   : > { %828 = vst [vmem:[%s1276_s17 + $0x588] sm:$0xff] %v572_v37  ;;  %v604_v37 = vmax.f32 %v348_v32, 0.0  ;;  %v380_v32 = vld [vmem:[%s1263_s24 + $0x788] sm:$0xff] }
  0xde   : > { %829 = vst [vmem:[%s1276_s17 + $0x590] sm:$0xff] %v573_v39  ;;  %v605_v39 = vmax.f32 %v349_v34, 0.0  ;;  %v381_v34 = vld [vmem:[%s1263_s24 + $0x790] sm:$0xff] }
  0xdf   : > { %830 = vst [vmem:[%s1276_s17 + $0x598] sm:$0xff] %v574_v41  ;;  %v606_v41 = vmax.f32 %v350_v36, 0.0  ;;  %v382_v36 = vld [vmem:[%s1263_s24 + $0x798] sm:$0xff] }
  0xe0   : > { %831 = vst [vmem:[%s1276_s17 + $0x5a0] sm:$0xff] %v575_v43  ;;  %v607_v43 = vmax.f32 %v351_v38, 0.0  ;;  %v383_v38 = vld [vmem:[%s1263_s24 + $0x7a0] sm:$0xff] }
  0xe1   : > { %832 = vst [vmem:[%s1276_s17 + $0x5a8] sm:$0xff] %v576_v45  ;;  %v608_v45 = vmax.f32 %v352_v40, 0.0  ;;  %v384_v40 = vld [vmem:[%s1263_s24 + $0x7a8] sm:$0xff] }
  0xe2   : > { %833 = vst [vmem:[%s1276_s17 + $0x5b0] sm:$0xff] %v577_v47  ;;  %v609_v47 = vmax.f32 %v353_v42, 0.0  ;;  %v385_v42 = vld [vmem:[%s1263_s24 + $0x7b0] sm:$0xff] }
  0xe3   : > { %834 = vst [vmem:[%s1276_s17 + $0x5b8] sm:$0xff] %v578_v49  ;;  %v610_v49 = vmax.f32 %v354_v44, 0.0  ;;  %v386_v44 = vld [vmem:[%s1263_s24 + $0x7b8] sm:$0xff] }
  0xe4   : > { %835 = vst [vmem:[%s1276_s17 + $0x5c0] sm:$0xff] %v579_v51  ;;  %v611_v51 = vmax.f32 %v355_v46, 0.0  ;;  %v387_v46 = vld [vmem:[%s1263_s24 + $0x7c0] sm:$0xff] }
  0xe5   : > { %836 = vst [vmem:[%s1276_s17 + $0x5c8] sm:$0xff] %v580_v53  ;;  %v612_v53 = vmax.f32 %v356_v48, 0.0  ;;  %v388_v48 = vld [vmem:[%s1263_s24 + $0x7c8] sm:$0xff] }
  0xe6   : > { %837 = vst [vmem:[%s1276_s17 + $0x5d0] sm:$0xff] %v581_v55  ;;  %v613_v55 = vmax.f32 %v357_v50, 0.0  ;;  %v389_v50 = vld [vmem:[%s1263_s24 + $0x7d0] sm:$0xff] }
  0xe7   : > { %838 = vst [vmem:[%s1276_s17 + $0x5d8] sm:$0xff] %v582_v57  ;;  %v614_v57 = vmax.f32 %v358_v52, 0.0  ;;  %v390_v52 = vld [vmem:[%s1263_s24 + $0x7d8] sm:$0xff] }
  0xe8   : > { %839 = vst [vmem:[%s1276_s17 + $0x5e0] sm:$0xff] %v583_v59  ;;  %v615_v59 = vmax.f32 %v359_v54, 0.0  ;;  %v391_v54 = vld [vmem:[%s1263_s24 + $0x7e0] sm:$0xff] }
  0xe9   : > { %840 = vst [vmem:[%s1276_s17 + $0x5e8] sm:$0xff] %v584_v61  ;;  %v616_v61 = vmax.f32 %v360_v56, 0.0  ;;  %v392_v56 = vld [vmem:[%s1263_s24 + $0x7e8] sm:$0xff] }
  0xea   : > { %841 = vst [vmem:[%s1276_s17 + $0x5f0] sm:$0xff] %v585_v63  ;;  %v617_v63 = vmax.f32 %v361_v58, 0.0  ;;  %v393_v58 = vld [vmem:[%s1263_s24 + $0x7f0] sm:$0xff] }
  0xeb   : > { %842 = vst [vmem:[%s1276_s17 + $0x5f8] sm:$0xff] %v586_v1  ;;  %v618_v1 = vmax.f32 %v362_v60, 0.0  ;;  %v394_v60 = vld [vmem:[%s1263_s24 + $0x7f8] sm:$0xff] }
  0xec   : > { %843 = vst [vmem:[%s1276_s17 + $0x600] sm:$0xff] %v587_v3  ;;  %v619_v3 = vmax.f32 %v363_v62, 0.0  ;;  %v649_v62 = vmax.f32 %v393_v58, 0.0 }
  0xed   : > { %844 = vst [vmem:[%s1276_s17 + $0x608] sm:$0xff] %v588_v5  ;;  %v620_v5 = vmax.f32 %v364_v0, 0.0 }
  0xee   : > { %845 = vst [vmem:[%s1276_s17 + $0x610] sm:$0xff] %v589_v7  ;;  %v621_v7 = vmax.f32 %v365_v2, 0.0 }
  0xef   : > { %846 = vst [vmem:[%s1276_s17 + $0x618] sm:$0xff] %v590_v9  ;;  %v622_v9 = vmax.f32 %v366_v4, 0.0 }
  0xf0   : > { %847 = vst [vmem:[%s1276_s17 + $0x620] sm:$0xff] %v591_v11  ;;  %v623_v11 = vmax.f32 %v367_v6, 0.0 }
  0xf1   : > { %848 = vst [vmem:[%s1276_s17 + $0x628] sm:$0xff] %v592_v13  ;;  %v624_v13 = vmax.f32 %v368_v8, 0.0 }
  0xf2   : > { %849 = vst [vmem:[%s1276_s17 + $0x630] sm:$0xff] %v593_v15  ;;  %v625_v15 = vmax.f32 %v369_v10, 0.0 }
  0xf3   : > { %850 = vst [vmem:[%s1276_s17 + $0x638] sm:$0xff] %v594_v17  ;;  %v626_v17 = vmax.f32 %v370_v12, 0.0 }
  0xf4   : > { %851 = vst [vmem:[%s1276_s17 + $0x640] sm:$0xff] %v595_v19  ;;  %v627_v19 = vmax.f32 %v371_v14, 0.0 }
  0xf5   : > { %852 = vst [vmem:[%s1276_s17 + $0x648] sm:$0xff] %v596_v21  ;;  %v628_v21 = vmax.f32 %v372_v16, 0.0 }
  0xf6   : > { %853 = vst [vmem:[%s1276_s17 + $0x650] sm:$0xff] %v597_v23  ;;  %v629_v23 = vmax.f32 %v373_v18, 0.0 }
  0xf7   : > { %854 = vst [vmem:[%s1276_s17 + $0x658] sm:$0xff] %v598_v25  ;;  %v630_v25 = vmax.f32 %v374_v20, 0.0 }
  0xf8   : > { %855 = vst [vmem:[%s1276_s17 + $0x660] sm:$0xff] %v599_v27  ;;  %v631_v27 = vmax.f32 %v375_v22, 0.0 }
  0xf9   : > { %856 = vst [vmem:[%s1276_s17 + $0x668] sm:$0xff] %v600_v29  ;;  %v632_v29 = vmax.f32 %v376_v24, 0.0 }
  0xfa   : > { %857 = vst [vmem:[%s1276_s17 + $0x670] sm:$0xff] %v601_v31  ;;  %v633_v31 = vmax.f32 %v377_v26, 0.0 }
  0xfb   : > { %858 = vst [vmem:[%s1276_s17 + $0x678] sm:$0xff] %v602_v33  ;;  %v634_v33 = vmax.f32 %v378_v28, 0.0 }
  0xfc   : > { %859 = vst [vmem:[%s1276_s17 + $0x680] sm:$0xff] %v603_v35  ;;  %v635_v35 = vmax.f32 %v379_v30, 0.0 }
  0xfd   : > { %860 = vst [vmem:[%s1276_s17 + $0x688] sm:$0xff] %v604_v37  ;;  %v636_v37 = vmax.f32 %v380_v32, 0.0 }
  0xfe   : > { %861 = vst [vmem:[%s1276_s17 + $0x690] sm:$0xff] %v605_v39  ;;  %v637_v39 = vmax.f32 %v381_v34, 0.0 }
  0xff   : > { %862 = vst [vmem:[%s1276_s17 + $0x698] sm:$0xff] %v606_v41  ;;  %v638_v41 = vmax.f32 %v382_v36, 0.0 }
 0x100   : > { %863 = vst [vmem:[%s1276_s17 + $0x6a0] sm:$0xff] %v607_v43  ;;  %v639_v43 = vmax.f32 %v383_v38, 0.0 }
 0x101   : > { %864 = vst [vmem:[%s1276_s17 + $0x6a8] sm:$0xff] %v608_v45  ;;  %v640_v45 = vmax.f32 %v384_v40, 0.0 }
 0x102   : > { %865 = vst [vmem:[%s1276_s17 + $0x6b0] sm:$0xff] %v609_v47  ;;  %v641_v47 = vmax.f32 %v385_v42, 0.0 }
 0x103   : > { %866 = vst [vmem:[%s1276_s17 + $0x6b8] sm:$0xff] %v610_v49  ;;  %v642_v49 = vmax.f32 %v386_v44, 0.0 }
 0x104   : > { %867 = vst [vmem:[%s1276_s17 + $0x6c0] sm:$0xff] %v611_v51  ;;  %v643_v51 = vmax.f32 %v387_v46, 0.0 }
 0x105   : > { %868 = vst [vmem:[%s1276_s17 + $0x6c8] sm:$0xff] %v612_v53  ;;  %v644_v53 = vmax.f32 %v388_v48, 0.0 }
 0x106   : > { %869 = vst [vmem:[%s1276_s17 + $0x6d0] sm:$0xff] %v613_v55  ;;  %v645_v55 = vmax.f32 %v389_v50, 0.0 }
 0x107   : > { %870 = vst [vmem:[%s1276_s17 + $0x6d8] sm:$0xff] %v614_v57  ;;  %v646_v57 = vmax.f32 %v390_v52, 0.0 }
 0x108   : > { %871 = vst [vmem:[%s1276_s17 + $0x6e0] sm:$0xff] %v615_v59  ;;  %v647_v59 = vmax.f32 %v391_v54, 0.0 }
 0x109   : > { %872 = vst [vmem:[%s1276_s17 + $0x6e8] sm:$0xff] %v616_v61  ;;  %v648_v61 = vmax.f32 %v392_v56, 0.0 }
 0x10a   : > { %873 = vst [vmem:[%s1276_s17 + $0x6f0] sm:$0xff] %v617_v63  ;;  %v650_v63 = vmax.f32 %v394_v60, 0.0 }
 0x10b   : > { %874 = vst [vmem:[%s1276_s17 + $0x6f8] sm:$0xff] %v618_v1 }
 0x10c   : > { %875 = vst [vmem:[%s1276_s17 + $0x700] sm:$0xff] %v619_v3 }
 0x10d   : > { %876 = vst [vmem:[%s1276_s17 + $0x708] sm:$0xff] %v620_v5 }
 0x10e   : > { %877 = vst [vmem:[%s1276_s17 + $0x710] sm:$0xff] %v621_v7 }
 0x10f   : > { %878 = vst [vmem:[%s1276_s17 + $0x718] sm:$0xff] %v622_v9 }
 0x110   : > { %879 = vst [vmem:[%s1276_s17 + $0x720] sm:$0xff] %v623_v11 }
 0x111   : > { %880 = vst [vmem:[%s1276_s17 + $0x728] sm:$0xff] %v624_v13 }
 0x112   : > { %881 = vst [vmem:[%s1276_s17 + $0x730] sm:$0xff] %v625_v15 }
 0x113   : > { %882 = vst [vmem:[%s1276_s17 + $0x738] sm:$0xff] %v626_v17 }
 0x114   : > { %883 = vst [vmem:[%s1276_s17 + $0x740] sm:$0xff] %v627_v19 }
 0x115   : > { %884 = vst [vmem:[%s1276_s17 + $0x748] sm:$0xff] %v628_v21 }
 0x116   : > { %885 = vst [vmem:[%s1276_s17 + $0x750] sm:$0xff] %v629_v23 }
 0x117   : > { %886 = vst [vmem:[%s1276_s17 + $0x758] sm:$0xff] %v630_v25 }
 0x118   : > { %887 = vst [vmem:[%s1276_s17 + $0x760] sm:$0xff] %v631_v27 }
 0x119   : > { %888 = vst [vmem:[%s1276_s17 + $0x768] sm:$0xff] %v632_v29 }
 0x11a   : > { %889 = vst [vmem:[%s1276_s17 + $0x770] sm:$0xff] %v633_v31 }
 0x11b   : > { %890 = vst [vmem:[%s1276_s17 + $0x778] sm:$0xff] %v634_v33 }
 0x11c   : > { %891 = vst [vmem:[%s1276_s17 + $0x780] sm:$0xff] %v635_v35 }
 0x11d   : > { %892 = vst [vmem:[%s1276_s17 + $0x788] sm:$0xff] %v636_v37 }
 0x11e   : > { %893 = vst [vmem:[%s1276_s17 + $0x790] sm:$0xff] %v637_v39 }
 0x11f   : > { %894 = vst [vmem:[%s1276_s17 + $0x798] sm:$0xff] %v638_v41 }
 0x120   : > { %895 = vst [vmem:[%s1276_s17 + $0x7a0] sm:$0xff] %v639_v43 }
 0x121   : > { %896 = vst [vmem:[%s1276_s17 + $0x7a8] sm:$0xff] %v640_v45 }
 0x122   : > { %897 = vst [vmem:[%s1276_s17 + $0x7b0] sm:$0xff] %v641_v47 }
 0x123   : > { %898 = vst [vmem:[%s1276_s17 + $0x7b8] sm:$0xff] %v642_v49 }
 0x124   : > { %899 = vst [vmem:[%s1276_s17 + $0x7c0] sm:$0xff] %v643_v51 }
 0x125   : > { %900 = vst [vmem:[%s1276_s17 + $0x7c8] sm:$0xff] %v644_v53 }
 0x126   : > { %901 = vst [vmem:[%s1276_s17 + $0x7d0] sm:$0xff] %v645_v55 }
 0x127   : > { %902 = vst [vmem:[%s1276_s17 + $0x7d8] sm:$0xff] %v646_v57 }
 0x128   : > { %903 = vst [vmem:[%s1276_s17 + $0x7e0] sm:$0xff] %v647_v59 }
 0x129   : > { %904 = vst [vmem:[%s1276_s17 + $0x7e8] sm:$0xff] %v648_v61 }
 0x12a   : > { %905 = vst [vmem:[%s1276_s17 + $0x7f0] sm:$0xff] %v649_v62 }
 0x12b   : > { %906 = vst [vmem:[%s1276_s17 + $0x7f8] sm:$0xff] %v650_v63 }
 0x12c   : > { %1119 = shalt.err (!%p1116_p4)
}
 0x12d   : > { %s1162_s16 = smov 128   ;;  %s1163_s20 = smov 8  }
 0x12e   : > { %1014 = dma.vmem_to_hbm [thread:$0]  (%p1223_p10), %s921_s10, 32768, %s923_s29, %s908_s30, %s1162_s16, %s1162_s16, %s1163_s20  }
 0x12f PF: > { %p1025_p5 = scmp.ge.s32.totalorder %s1158_s9, 2  ;;  %s937_s21 = sand.u32 1, %s1146_s6  }
 0x130   : > { %s938_s22 = scalar_lea.sflag [#allocation4], %s937_s21 }
 0x131   : > { %p1021_p7 = pnand %p1025_p5, %p1227_p11 }
 0x133   : > { %p1022_p8 = pneg %p1021_p7 }
 0x135   : > { %1141 = dma.done.wait (%p1022_p8), %s938_s22, 32768  }
 0x136   : > { %1143 = vsyncadd (%p1022_p8), %s938_s22, 4294934528  ;;  %p14_p9 = scmp.ge.s32.totalorder %s1199_s12, 6   ;;  %s1823_s6 = smov %s1150_s7 }
 0x137   : > { %s1824_s7 = smov %s1154_s8  ;;  %s1825_s8 = smov %s1211_s15 }
 0x138   : > { %s1826_s9 = smov %s1199_s12  ;;  %16 = sbr.rel (!%p14_p9) target bundleno = 5 (0x5), region = 69 }
 0x13d   :  { %944 = vsyncpa [#allocation3], 1 }
 0x13e   :  { %946 = vsyncpa [#allocation3 + $0x1], 1 }
 0x13f   :  { %947 = vsyncpa [#allocation4], 1 }
 0x140   :  { %949 = vsyncpa [#allocation4 + $0x1], 1 }

</bundles_post_ra>
